<compile_context>
chip_gen: v7x
topology: tpu7x:2x2x1
jax: 0.10.0
libtpu: 0.0.40
codegen_flags: <defaults>
</compile_context>

<pallas_src>
import functools

import jax
import jax.numpy as jnp
from jax.experimental import pallas as pl
from jax.experimental.pallas import tpu as pltpu


def _mln_kernel(x_ref, c_ref, wr_ref, br_ref, wgb_ref, bgb_ref, o_ref):
    f_dim = o_ref.shape[-1]

    # ---- LayerNorm(x) over the feature axis: two-pass, f32, eps=1e-5, no affine.
    x = x_ref[...].astype(jnp.float32)
    mean = jnp.mean(x, axis=-1, keepdims=True)
    xc = x - mean
    var = jnp.mean(xc * xc, axis=-1, keepdims=True)
    x_ln = xc * jax.lax.rsqrt(var + 1e-5)

    # ---- reduce: ReLU(c @ Wr + br).  bf16 operands, f32 accumulation (MXU).
    h = jnp.dot(c_ref[...], wr_ref[...], preferred_element_type=jnp.float32)
    h = jnp.maximum(h + br_ref[...], 0.0)

    # ---- fused gamma|beta projection: one matmul to [tile, 2*f_dim], then a
    #      static 128-aligned lane slice (f_dim % 128 == 0 for the default 256).
    gb = jnp.dot(h.astype(jnp.bfloat16), wgb_ref[...],
                 preferred_element_type=jnp.float32) + bgb_ref[...]
    gamma = gb[:, :f_dim]
    beta = gb[:, f_dim:]

    # ---- modulate
    o_ref[...] = (gamma * x_ln + beta).astype(o_ref.dtype)


def fuse_mln_params(params):
    """One-time weight fusion / dtype cast. Call ONCE, outside the hot path.

    Returns MXU-ready operands: bf16 Wr, bf16 [Wg|Wb], f32 biases.
    """
    return {
        "wr": params["wr"].astype(jnp.bfloat16),                                       # [c_dim, f_dim]
        "br": params["br"].astype(jnp.float32),                                        # [1, f_dim]
        "wgb": jnp.concatenate([params["wg"], params["wb"]], axis=1).astype(jnp.bfloat16),  # [f_dim, 2f]
        "bgb": jnp.concatenate([params["bg"], params["bb"]], axis=1).astype(jnp.float32),   # [1, 2f]
    }


@functools.partial(jax.jit, static_argnames=("tile_rows",))
def mln_forward(x, c, fused, *, tile_rows=512):
    """x: [..., f_dim], c: [..., c_dim] with identical leading dims.

    `fused` is the output of fuse_mln_params (pre-fused / pre-cast weights).
    tile_rows: sweep 512-1024 on v5e/v6e (128 MiB VMEM); keep 256-512 on v7x
    for large f_dim (64 MiB VMEM).
    """
    f_dim = x.shape[-1]
    c_dim = c.shape[-1]
    lead = x.shape[:-1]
    n = 1
    for d in lead:
        n *= d

    x2 = x.reshape(n, f_dim)
    c2 = c.reshape(n, c_dim).astype(jnp.bfloat16)   # halve c DMA bytes; MXU is bf16 anyway

    wr, br, wgb, bgb = fused["wr"], fused["br"], fused["wgb"], fused["bgb"]

    # ---- Row tile selection.
    #  * large tiles amortize per-grid-step overhead (HBM-bound kernel),
    #  * but keep >= 2 grid steps whenever there is more than one sublane-row
    #    of work so v7x's second TensorCore is not left idle,
    #  * clamp to the sublane-padded row count for tiny inputs.
    n_pad8 = -(-n // 8) * 8
    tile_cap = max(8, (tile_rows // 8) * 8)
    if n_pad8 > 8:
        half = -(-((n_pad8 + 1) // 2) // 8) * 8      # ~n/2, rounded up to 8
        tile = max(8, min(tile_cap, half, n_pad8))
    else:
        tile = 8
    grid = (pl.cdiv(n, tile),)

    x_bytes = jnp.dtype(x.dtype).itemsize
    out_bytes = x_bytes

    # VMEM budget: double-buffered activations, single-buffered weights,
    # plus headroom for f32 intermediates (x_ln, h, gb). Cap at 48 MiB so the
    # same config fits v7x's 64 MiB physical VMEM.
    w_bytes = (c_dim * f_dim + 2 * f_dim * f_dim) * 2 + 3 * f_dim * 4
    act_bytes = 2 * tile * (f_dim * x_bytes + c_dim * 2 + f_dim * out_bytes)
    scratch_bytes = 8 * tile * f_dim * 4
    vmem_limit = int(min(max(1.25 * (w_bytes + act_bytes + scratch_bytes),
                             16 * 1024 * 1024), 48 * 1024 * 1024))

    cost = pl.CostEstimate(
        flops=2 * n * (c_dim * f_dim + 2 * f_dim * f_dim),
        transcendentals=n,  # one rsqrt per row
        bytes_accessed=(n * f_dim * x_bytes          # x in
                        + n * f_dim * out_bytes      # out
                        + n * c_dim * 2              # c in (bf16)
                        + (c_dim * f_dim + 2 * f_dim * f_dim) * 2   # bf16 weights
                        + 3 * f_dim * 4),                           # f32 biases
    )

    def build_call(weight_buffering):
        kw = {} if weight_buffering is None else {"pipeline_mode": weight_buffering}
        # grid-invariant operands: constant index_map -> single-buffer them.
        const2d = lambda shape: pl.BlockSpec(shape, lambda i: (0, 0), **kw)
        return pl.pallas_call(
            _mln_kernel,
            out_shape=jax.ShapeDtypeStruct((n, f_dim), x.dtype),
            grid_spec=pltpu.PrefetchScalarGridSpec(
                num_scalar_prefetch=0,
                grid=grid,
                in_specs=[
                    pl.BlockSpec((tile, f_dim), lambda i: (i, 0)),  # x rows
                    pl.BlockSpec((tile, c_dim), lambda i: (i, 0)),  # c rows (bf16)
                    const2d((c_dim, f_dim)),        # Wr (bf16, stored [in, out])
                    const2d((1, f_dim)),            # br (f32)
                    const2d((f_dim, 2 * f_dim)),    # Wg|Wb fused (bf16)
                    const2d((1, 2 * f_dim)),        # bg|bb fused (f32)
                ],
                out_specs=pl.BlockSpec((tile, f_dim), lambda i: (i, 0)),
            ),
            compiler_params=pltpu.CompilerParams(
                dimension_semantics=("parallel",),
                vmem_limit_bytes=vmem_limit,
            ),
            cost_estimate=cost,
        )

    try:
        out2 = build_call(pl.Buffered(1))(x2, c2, wr, br, wgb, bgb)
    except Exception:
        # TODO(synk): some JAX builds reject pipeline_mode on pallas_call
        # BlockSpecs; fall back to default double-buffered weights (perf-only).
        out2 = build_call(None)(x2, c2, wr, br, wgb, bgb)

    return out2.reshape(*lead, f_dim)


def init_mln_params(key, c_dim, f_dim, dtype=jnp.float32):
    """Deterministic parameter init matching MLN.__init__ / init_weight.

    reduce.Linear: uniform(+-1/sqrt(c_dim)) (deterministic via PRNGKey).
    gamma: weight = 0, bias = 1.   beta: weight = 0, bias = 0.
    Weights stored as [in, out] (already transposed vs. torch Linear).
    """
    k1, k2 = jax.random.split(key)
    bound = 1.0 / (c_dim ** 0.5)
    wr = jax.random.uniform(k1, (c_dim, f_dim), dtype, -bound, bound)
    br = jax.random.uniform(k2, (1, f_dim), dtype, -bound, bound)
    wg = jnp.zeros((f_dim, f_dim), dtype)
    bg = jnp.ones((1, f_dim), dtype)
    wb = jnp.zeros((f_dim, f_dim), dtype)
    bb = jnp.zeros((1, f_dim), dtype)
    return {"wr": wr, "br": br, "wg": wg, "bg": bg, "wb": wb, "bb": bb}


def mln_reference(x, c, params):
    """Pure-JAX f32 reference for correctness checking."""
    xf = x.astype(jnp.float32)
    mean = jnp.mean(xf, axis=-1, keepdims=True)
    var = jnp.mean((xf - mean) ** 2, axis=-1, keepdims=True)
    x_ln = (xf - mean) * jax.lax.rsqrt(var + 1e-5)
    h = jnp.maximum(c.astype(jnp.float32) @ params["wr"] + params["br"][0], 0.0)
    gamma = h @ params["wg"] + params["bg"][0]
    beta = h @ params["wb"] + params["bb"][0]
    return (gamma * x_ln + beta).astype(x.dtype)


if __name__ == "__main__":
    # Small shapes consistent with the module: batch=2, seq=8 queries,
    # c_dim=32 latent code, f_dim=256 (module default -> lane-dense output).
    batch, seq, c_dim, f_dim = 2, 8, 32, 256

    key = jax.random.PRNGKey(0)
    kx, kc, kp, kr = jax.random.split(key, 4)
    x = jax.random.normal(kx, (batch, seq, f_dim), jnp.float32)
    c = jax.random.normal(kc, (batch, seq, c_dim), jnp.float32)

    # Check 1: module's deterministic init (gamma W=0,b=1; beta W=0,b=0).
    params = init_mln_params(kp, c_dim, f_dim)
    fused = fuse_mln_params(params)          # one-time fusion, outside hot path
    out = jax.block_until_ready(mln_forward(x, c, fused))
    ref = mln_reference(x, c, params)
    assert out.shape == (batch, seq, f_dim)
    assert jnp.allclose(out, ref, atol=1e-4, rtol=1e-4), "mismatch (init params)"

    # Check 2: random gamma/beta params exercise the bf16 MXU path
    # (relaxed tolerance vs. the f32 reference due to bf16 matmul operands).
    k1, k2, k3, k4 = jax.random.split(kr, 4)
    params_r = dict(params)
    params_r["wg"] = 0.1 * jax.random.normal(k1, (f_dim, f_dim), jnp.float32)
    params_r["wb"] = 0.1 * jax.random.normal(k2, (f_dim, f_dim), jnp.float32)
    params_r["bg"] = jax.random.normal(k3, (1, f_dim), jnp.float32)
    params_r["bb"] = jax.random.normal(k4, (1, f_dim), jnp.float32)
    fused_r = fuse_mln_params(params_r)
    out_r = jax.block_until_ready(mln_forward(x, c, fused_r))
    ref_r = mln_reference(x, c, params_r)
    assert jnp.allclose(out_r, ref_r, atol=5e-2, rtol=5e-2), "mismatch (random params)"

    print("KERNEL_OK")
</pallas_src>

<mosaic_0001>
module attributes {stable_mosaic.version = 11 : i64} {
  func.func @_mln_kernel(%arg0: i32, %arg1: memref<8x256xf32, #tpu.memory_space<vmem>>, %arg2: memref<8x32xbf16, #tpu.memory_space<vmem>>, %arg3: memref<32x256xbf16, #tpu.memory_space<vmem>>, %arg4: memref<1x256xf32, #tpu.memory_space<vmem>>, %arg5: memref<256x512xbf16, #tpu.memory_space<vmem>>, %arg6: memref<1x512xf32, #tpu.memory_space<vmem>>, %arg7: memref<8x256xf32, #tpu.memory_space<vmem>>) attributes {dimension_semantics = [#tpu.dimension_semantics<parallel>], iteration_bounds = array<i64: 2>, scalar_prefetch = 0 : i64, scratch_operands = 0 : i64, tpu.core_type = #tpu.core_type<tc>, window_params = [{transform_indices = @transform_0, window_bounds = array<i64: 8, 256>}, {transform_indices = @transform_1, window_bounds = array<i64: 8, 32>}, {pipeline_mode = #tpu.pipeline_mode<synchronous>, transform_indices = @transform_2, window_bounds = array<i64: 32, 256>}, {pipeline_mode = #tpu.pipeline_mode<synchronous>, transform_indices = @transform_3, window_bounds = array<i64: 1, 256>}, {pipeline_mode = #tpu.pipeline_mode<synchronous>, transform_indices = @transform_4, window_bounds = array<i64: 256, 512>}, {pipeline_mode = #tpu.pipeline_mode<synchronous>, transform_indices = @transform_5, window_bounds = array<i64: 1, 512>}, {transform_indices = @transform_6, window_bounds = array<i64: 8, 256>}]} {
    %c0 = arith.constant 0 : index
    %c0_0 = arith.constant 0 : index
    %0 = vector.load %arg1[%c0, %c0_0] : memref<8x256xf32, #tpu.memory_space<vmem>>, vector<8x256xf32>
    %cst = arith.constant dense<0.000000e+00> : vector<8xf32>
    %1 = vector.multi_reduction <add>, %0, %cst [1] : vector<8x256xf32> to vector<8xf32>
    %2 = vector.shape_cast %1 : vector<8xf32> to vector<8x1xf32>
    %cst_1 = arith.constant 2.560000e+02 : f32
    %3 = vector.broadcast %cst_1 : f32 to vector<8x1xf32>
    %4 = arith.divf %2, %3 : vector<8x1xf32>
    %5 = vector.broadcast %4 : vector<8x1xf32> to vector<8x256xf32>
    %6 = arith.subf %0, %5 : vector<8x256xf32>
    %7 = arith.mulf %6, %6 : vector<8x256xf32>
    %cst_2 = arith.constant dense<0.000000e+00> : vector<8xf32>
    %8 = vector.multi_reduction <add>, %7, %cst_2 [1] : vector<8x256xf32> to vector<8xf32>
    %9 = vector.shape_cast %8 : vector<8xf32> to vector<8x1xf32>
    %cst_3 = arith.constant 2.560000e+02 : f32
    %10 = vector.broadcast %cst_3 : f32 to vector<8x1xf32>
    %11 = arith.divf %9, %10 : vector<8x1xf32>
    %cst_4 = arith.constant 9.99999974E-6 : f32
    %12 = vector.broadcast %cst_4 : f32 to vector<8x1xf32>
    %13 = arith.addf %11, %12 : vector<8x1xf32>
    %14 = math.rsqrt %13 : vector<8x1xf32>
    %15 = vector.broadcast %14 : vector<8x1xf32> to vector<8x256xf32>
    %16 = arith.mulf %6, %15 : vector<8x256xf32>
    %c0_5 = arith.constant 0 : index
    %c0_6 = arith.constant 0 : index
    %17 = vector.load %arg2[%c0_5, %c0_6] : memref<8x32xbf16, #tpu.memory_space<vmem>>, vector<8x32xbf16>
    %c0_7 = arith.constant 0 : index
    %c0_8 = arith.constant 0 : index
    %18 = vector.load %arg3[%c0_7, %c0_8] : memref<32x256xbf16, #tpu.memory_space<vmem>>, vector<32x256xbf16>
    %cst_9 = arith.constant dense<0.000000e+00> : vector<8x256xf32>
    %19 = tpu.matmul %17, %18, %cst_9 {dimension_numbers = #tpu.dot_dimension_numbers<[1], [0], [0], [1], [0, 0, 1, 1], [], []>} : vector<8x32xbf16>, vector<32x256xbf16>, vector<8x256xf32> -> vector<8x256xf32>
    %c0_10 = arith.constant 0 : index
    %c0_11 = arith.constant 0 : index
    %20 = vector.load %arg4[%c0_10, %c0_11] : memref<1x256xf32, #tpu.memory_space<vmem>>, vector<1x256xf32>
    %21 = vector.broadcast %20 : vector<1x256xf32> to vector<8x256xf32>
    %22 = arith.addf %19, %21 : vector<8x256xf32>
    %cst_12 = arith.constant 0.000000e+00 : f32
    %23 = vector.broadcast %cst_12 : f32 to vector<8x256xf32>
    %24 = arith.maximumf %22, %23 : vector<8x256xf32>
    %25 = arith.truncf %24 : vector<8x256xf32> to vector<8x256xbf16>
    %c0_13 = arith.constant 0 : index
    %c0_14 = arith.constant 0 : index
    %26 = vector.load %arg5[%c0_13, %c0_14] : memref<256x512xbf16, #tpu.memory_space<vmem>>, vector<256x512xbf16>
    %cst_15 = arith.constant dense<0.000000e+00> : vector<8x512xf32>
    %27 = tpu.matmul %25, %26, %cst_15 {dimension_numbers = #tpu.dot_dimension_numbers<[1], [0], [0], [1], [0, 0, 1, 1], [], []>} : vector<8x256xbf16>, vector<256x512xbf16>, vector<8x512xf32> -> vector<8x512xf32>
    %c0_16 = arith.constant 0 : index
    %c0_17 = arith.constant 0 : index
    %28 = vector.load %arg6[%c0_16, %c0_17] : memref<1x512xf32, #tpu.memory_space<vmem>>, vector<1x512xf32>
    %29 = vector.broadcast %28 : vector<1x512xf32> to vector<8x512xf32>
    %30 = arith.addf %27, %29 : vector<8x512xf32>
    %31 = vector.extract_strided_slice %30 {offsets = [0, 0], sizes = [8, 256], strides = [1, 1]} : vector<8x512xf32> to vector<8x256xf32>
    %32 = vector.extract_strided_slice %30 {offsets = [0, 256], sizes = [8, 256], strides = [1, 1]} : vector<8x512xf32> to vector<8x256xf32>
    %33 = arith.mulf %31, %16 : vector<8x256xf32>
    %34 = arith.addf %33, %32 : vector<8x256xf32>
    %c0_18 = arith.constant 0 : index
    %c0_19 = arith.constant 0 : index
    %35 = vector.load %arg7[%c0_18, %c0_19] : memref<8x256xf32, #tpu.memory_space<vmem>>, vector<8x256xf32>
    tpu.vector_store %arg7[%c0_18, %c0_19], %34 {strides = array<i32>} : memref<8x256xf32, #tpu.memory_space<vmem>>, vector<8x256xf32>,
    return
  }
  func.func @transform_0(%arg0: i32) -> (i32, i32) {
    %c0_i32 = arith.constant 0 : i32
    %c0_i32_0 = arith.constant 0 : i32
    return %arg0, %c0_i32 : i32, i32
  }
  func.func @transform_1(%arg0: i32) -> (i32, i32) {
    %c0_i32 = arith.constant 0 : i32
    %c0_i32_0 = arith.constant 0 : i32
    return %arg0, %c0_i32 : i32, i32
  }
  func.func @transform_2(%arg0: i32) -> (i32, i32) {
    %c0_i32 = arith.constant 0 : i32
    %c0_i32_0 = arith.constant 0 : i32
    %c0_i32_1 = arith.constant 0 : i32
    return %c0_i32, %c0_i32_0 : i32, i32
  }
  func.func @transform_3(%arg0: i32) -> (i32, i32) {
    %c0_i32 = arith.constant 0 : i32
    %c0_i32_0 = arith.constant 0 : i32
    %c0_i32_1 = arith.constant 0 : i32
    return %c0_i32, %c0_i32_0 : i32, i32
  }
  func.func @transform_4(%arg0: i32) -> (i32, i32) {
    %c0_i32 = arith.constant 0 : i32
    %c0_i32_0 = arith.constant 0 : i32
    %c0_i32_1 = arith.constant 0 : i32
    return %c0_i32, %c0_i32_0 : i32, i32
  }
  func.func @transform_5(%arg0: i32) -> (i32, i32) {
    %c0_i32 = arith.constant 0 : i32
    %c0_i32_0 = arith.constant 0 : i32
    %c0_i32_1 = arith.constant 0 : i32
    return %c0_i32, %c0_i32_0 : i32, i32
  }
  func.func @transform_6(%arg0: i32) -> (i32, i32) {
    %c0_i32 = arith.constant 0 : i32
    %c0_i32_0 = arith.constant 0 : i32
    return %arg0, %c0_i32 : i32, i32
  }
}

</mosaic_0001>

<bundles_post_ra>
// kernel: mln_forward.1
= control target key start
LH: loop header
LB: loop body
LE: loop exit
PB: predicated region body
PF: predicated region fallthrough
CT: control target
= control target key end

     0   :  { %11 = vsyncpa [#allocation3], 0  ;;  %s1661_s0 = inlined_call_operand.hbm [shape: f32[16,256], index: 0, kind: input, shape index: {}]   ;;  %s1662_s1 = inlined_call_operand.vmem [shape: bf16[16,32], index: 1, kind: input, shape index: {}]   ;;  %s1663_s2 = inlined_call_operand.vmem [shape: bf16[32,256], index: 2, kind: input, shape index: {}]   ;;  %s1664_s3 = inlined_call_operand.vmem [shape: f32[1,256], index: 3, kind: input, shape index: {}]   ;;  %s1665_s4 = inlined_call_operand.hbm [shape: bf16[256,512], index: 4, kind: input, shape index: {}]   ;;  %s1666_s5 = inlined_call_operand.vmem [shape: f32[1,512], index: 5, kind: input, shape index: {}]   ;;  %s1667_s6 = inlined_call_operand.hbm [shape: f32[16,256], index: 6, kind: output, shape index: {}]  }
   0x1   :  { %13 = vsyncpa [#allocation3 + $0x1], 0 }
   0x2   :  { %14 = vsyncpa [#allocation6], 0 }
   0x3   :  { %15 = vsyncpa [#allocation4], 0 }
   0x4   :  { %17 = vsyncpa [#allocation4 + $0x1], 0  ;;  %s1430_s21 = smov 0   ;;  %s1432_s22 = smov 0  }
   0x5   :  { %s1434_s23 = smov 0   ;;  %s1436_s24 = smov 0  }
   0x6 LB: > { %s1451_s25 = sadd.s32 4294967295, %s1387_s24   ;;  %s1007_s26 = sadd.s32 4294967294, %s1387_s24   ;;  %s1387_s24 = sphi %s1436_s24, %s1687_s24   ;;  %s1383_s23 = sphi %s1434_s23, %s1686_s23   ;;  %s1379_s22 = sphi %s1432_s22, %s1685_s22   ;;  %s1375_s21 = sphi %s1430_s21, %s1684_s21  }
   0x7   : > { %p43_p0 = scmp.ne.s32.totalorder %s1379_s22, %s1375_s21  ;;  %p1668_p1 = scmp.eq.s32.totalorder %s1451_s25, 0 }
   0x8   : > { %p183_p3 = scmp.eq.s32.totalorder %s1007_s26, 1  ;;  %p1008_p5 = scmp.ge.s32.totalorder %s1387_s24, 1 }
   0x9   : > { %p1460_p4 = por %p1668_p1, %p43_p0  ;;  %p190_p7 = scmp.lt.s32.totalorder %s1387_s24, 3 }
   0xa   : > { %p1465_p6 = por %p183_p3, %p43_p0  ;;  %s1389_s30 = smov [#allocation5]  }
   0xb   : > { %s1671_s27 = scalar_select %p1460_p4, 1, 0 }
   0xc   : > { %s1672_s28 = scalar_select %p1465_p6, 1, 0 }
   0xd   : > { %p1470_p8 = pnand %p1008_p5, %p190_p7  ;;  %s208_s7 = sshll.u32 %s1389_s30, 4  ;;  %s1474_s7 = int_to_ptr.vmem [resolvable:$true] %s208_s7 }
   0xe   : > { %s1486_s9 = sadd.s32 1, %s1387_s24   ;;  %s30_s10 = sadd.s32 1, %s1383_s23 }
   0xf   : > { %s1673_s29 = scalar_select %p1470_p8, 1, 0 }
  0x10   : > { %p1103_p9 = pneg %p1470_p8  ;;  %s27_s11 = ssub.s32 %s1387_s24, %s1486_s9 }
  0x11   : > { %s1259_s14 = scalar_lea.hbm %s1665_s4, 8192 }
  0x12   : > { %p1481_p11 = pnand %p1103_p9, %p1668_p1  ;;  %p1260_p12 = scmp.ne.s32.totalorder %s1665_s4, %s1259_s14 }
  0x13   : > { %p1266_p5 = scmp.lt.u32.totalorder %s1259_s14, %s1665_s4 }
  0x14   : > { %p1261_p13 = pneg %p1481_p11 }
  0x16   : > { %p1262_p0 = pnand %p1261_p13, %p1260_p12 }
  0x18   : > { %p1263_p3 = pneg %p1262_p0 }
  0x1a   : > { %p1268_p7 = pnand %p1266_p5, %p1263_p3 }
  0x1c   : > { %1271 = shalt.err (!%p1268_p7)
}
  0x1d   : > { %s1272_s19 = scalar_lea.vmem %s1474_s7, 8192  ;;  %p1280_p2 = scmp.lt.s32.totalorder %s1474_s7, %s1474_s7 }
  0x1e   : > { %p1273_p9 = scmp.ne.s32.totalorder %s1474_s7, %s1272_s19  ;;  %p1281_p6 = scmp.lt.s32.totalorder %s1272_s19, %s1272_s19 }
  0x20   : > { %p1275_p10 = pnand %p1273_p9, %p1261_p13  ;;  %p1282_p4 = por %p1281_p6, %p1280_p2 }
  0x22   : > { %p1276_p1 = pneg %p1275_p10 }
  0x24   : > { %p1283_p8 = pnand %p1282_p4, %p1276_p1 }
  0x26   : > { %1286 = shalt.err (!%p1283_p8)
}
  0x27   : > { %s1390_s20 = smov 256   ;;  %s1391_s26 = smov 16  }
  0x28   : > { %1106 = dma.hbm_to_vmem [thread:$0]  (!%p1481_p11), %s1665_s4, 8192, %s1474_s7, [#allocation6], %s1390_s20, %s1390_s20, %s1391_s26  }
  0x29   : > { %p28_p2 = scmp.eq.s32.totalorder %s27_s11, 0  ;;  %p37_p1 = scmp.ne.s32.totalorder %s1383_s23, %s1379_s22 }
  0x2a   : > { %p38_p4 = scmp.eq.s32.totalorder %s1387_s24, 0  ;;  %p1116_p6 = scmp.lt.s32.totalorder %s1387_s24, 2 }
  0x2b   : > { %s1517_s13 = scalar_select %p28_p2, %s1383_s23, %s30_s10  }
  0x2c   : > { %p39_p8 = por %p38_p4, %p37_p1  ;;  %p1675_p10 = scmp.eq.s32.totalorder %s1451_s25, 1 }
  0x2d   : > { %s225_s15 = sand.u32 1, %s1383_s23   ;;  %s1093_s16 = sshll.u32 %s1387_s24, 8 }
  0x2e   : > { %p1521_p12 = por %p1675_p10, %p37_p1  ;;  %s1011_s17 = sshll.u32 %s225_s15, 4 }
  0x2f   : > { %s1530_s19 = scalar_lea.hbm %s1661_s0, %s1093_s16  ;;  %s229_s7 = scalar_lea.vmem [#allocation2], %s1011_s17 }
  0x30   : > { %s237_s10 = sshll.u32 %s229_s7, 4  ;;  %p1532_p11 = pnand %p1116_p6, %p39_p8  ;;  %s1536_s10 = int_to_ptr.vmem [resolvable:$true] %s237_s10 }
  0x31   : > { %s226_s20 = scalar_lea.sflag [#allocation3], %s225_s15  ;;  %s1287_s26 = scalar_lea.hbm %s1530_s19, 256 }
  0x32   : > { %p1288_p13 = scmp.ne.s32.totalorder %s1530_s19, %s1287_s26  ;;  %p1289_p0 = pneg %p1532_p11 }
  0x33   : > { %s1292_s16 = scalar_lea.hbm %s1661_s0, 512  ;;  %p1293_p7 = scmp.lt.u32.totalorder %s1530_s19, %s1661_s0 }
  0x34   : > { %p1290_p3 = pnand %p1289_p0, %p1288_p13  ;;  %p1294_p9 = scmp.lt.u32.totalorder %s1292_s16, %s1287_s26 }
  0x35   : > { %p1296_p1 = scmp.lt.u32.totalorder %s1287_s26, %s1530_s19 }
  0x36   : > { %p1291_p5 = pneg %p1290_p3  ;;  %p1295_p2 = por %p1294_p9, %p1293_p7 }
  0x38   : > { %p1297_p4 = por %p1296_p1, %p1295_p2 }
  0x3a   : > { %p1298_p6 = pnand %p1297_p4, %p1291_p5 }
  0x3c   : > { %1301 = shalt.err (!%p1298_p6)
}
  0x3d   : > { %s1302_s15 = scalar_lea.vmem %s1536_s10, 256  ;;  %s1392_s18 = smov [#allocation2]  }
  0x3e   : > { %p1303_p8 = scmp.ne.s32.totalorder %s1536_s10, %s1302_s15  ;;  %s1307_s7 = sshll.u32 %s1392_s18, 4  ;;  %s1308_s7 = int_to_ptr.vmem [resolvable:$false] %s1307_s7 }
  0x3f   : > { %s1309_s30 = scalar_lea.vmem %s1308_s7, 512  ;;  %p1310_p3 = scmp.lt.s32.totalorder %s1536_s10, %s1308_s7 }
  0x40   : > { %p1305_p10 = pnand %p1303_p8, %p1289_p0  ;;  %p1311_p7 = scmp.lt.s32.totalorder %s1309_s30, %s1302_s15 }
  0x42   : > { %p1306_p13 = pneg %p1305_p10  ;;  %p1312_p9 = por %p1311_p7, %p1310_p3 }
  0x44   : > { %p1313_p2 = pnand %p1312_p9, %p1306_p13 }
  0x46   : > { %1316 = shalt.err (!%p1313_p2)
}
  0x47   : > { %1110 = dma.hbm_to_vmem [thread:$0]  (!%p1532_p11), %s1530_s19, 256, %s1536_s10, %s226_s20  }
  0x48   : > { %p1678_p5 = scmp.ne.s32.totalorder %s1673_s29, 0 }
  0x49   : > { %s1566_s26 = sand.u32 (!%p1678_p5), 1, %s1379_s22   ;;  %p1679_p0 = scmp.ne.s32.totalorder (!%p1678_p5), %s1671_s27, 0 }
  0x4a   : > { %253 = sbr.rel (%p1678_p5) target bundleno = 547 (0x223), region = 44  ;;  %s1015_s12 = sshll.u32 (!%p1678_p5), %s1566_s26, 4 }
  0x4b   : > { %s256_s16 = scalar_lea.sflag (!%p1678_p5), [#allocation3], %s1566_s26  ;;  %s259_s17 = scalar_lea.vmem (!%p1678_p5), [#allocation2], %s1015_s12 }
  0x51   : > { %1362 = dma.done.wait (%p1679_p0), %s256_s16, 256  }
  0x52   : > { %1364 = vsyncadd (%p1679_p0), %s256_s16, 4294967040  ;;  %p1680_p11 = scmp.eq.s32.totalorder %s1451_s25, 0 }
  0x54   : > { %1366 = dma.done.wait (%p1680_p11), [#allocation6], 8192   ;;  %p1681_p1 = pmov %p1680_p11 }
  0x55   : > { %p296_p4 = scmp.lt.s32.totalorder %s1451_s25, 1  ;;  %v1393_v0 = vmov 0   ;;  %v1155_v1 = vld [vmem:[%s1663_s2 + $0x4] ss:$8 sps:$4 sm:$0xff]   ;;  %v1157_v4 = vld [vmem:[%s1663_s2] ss:$8 sps:$4 sm:$0xff]  }
  0x56   : > { %1368 = vsyncadd (%p1681_p1), [#allocation6], 4294959104  ;;  %393 = vmatprep.mubr.bf16.mxu0 %v1393_v0  ;;  %v1585_v2 = vld [vmem:[%s259_s17] sm:$0xff]  ;;  %v1587_v3 = vld [vmem:[%s259_s17 + $0x8] sm:$0xff]  ;;  %361 = vmatprep.subr.bf16.mxu0 %v1155_v1  ;;  %vm357_vm0 = vcmask 261120   ;;  %s1094_s27 = sshll.u32 %s1451_s25, 8 }
  0x57   : > { %s297_s29 = scalar_select %p296_p4, %s1451_s25, 1  ;;  %v303_v5 = vadd.f32 %v1587_v3, %v1585_v2  ;;  %v1158_v6 = vld [vmem:[%s1663_s2 + $0x14] ss:$8 sps:$4 sm:$0xff]   ;;  %362 = vmatpush1.bf16.msra.mxu0 %v1157_v4  ;;  %v1160_v7 = vld [vmem:[%s1663_s2 + $0x10] ss:$8 sps:$4 sm:$0xff]  }
  0x58   : > { %363 = vmatprep.subr.bf16.mxu0 %v1158_v6  ;;  %v1161_v9 = vld [vmem:[#allocation5 + $0x4] ss:$16 sps:$4 sm:$0xff]   ;;  %v1163_v10 = vld [vmem:[#allocation5 + $0x8] ss:$16 sps:$4 sm:$0xff]   ;;  %v1165_v11 = vld [vmem:[#allocation5 + $0xc] ss:$16 sps:$4 sm:$0xff]   ;;  %s1617_s7 = scalar_lea.hbm %s1667_s6, %s1094_s27 }
  0x59   : > { %s1018_s19 = sshll.u32 %s297_s29, 2  ;;  %304 = vadd.xlane.f32.xlu0 %v303_v5  ;;  %v1166_v12 = vld [vmem:[#allocation5] ss:$16 sps:$4 sm:$0xff]   ;;  %v1167_v13 = vld [vmem:[#allocation5 + $0x24] ss:$16 sps:$4 sm:$0xff]   ;;  %812 = vmatprep.subr.bf16.mxu1 %v1161_v9  ;;  %s295_s20 = scalar_lea.vmem [#allocation7], %s1015_s12 }
  0x5a   : > { %s299_s30 = scalar_lea.vmem %s1662_s1, %s1018_s19  ;;  %v1171_v14 = vld [vmem:[#allocation5 + $0x2c] ss:$16 sps:$4 sm:$0xff]   ;;  %813 = vmatpush1.bf16.msra.mxu1 %v1166_v12  ;;  %v1169_v15 = vld [vmem:[#allocation5 + $0x28] ss:$16 sps:$4 sm:$0xff]   ;;  %v1172_v16 = vld [vmem:[#allocation5 + $0x20] ss:$16 sps:$4 sm:$0xff]  }
  0x5b   : > { %v320_v8 = vld [vmem:[%s299_s30] sm:$0xf]  ;;  %364 = vmatpush1.bf16.msra.mxu0 %v1160_v7  ;;  %814 = vmatprep.subr.bf16.mxu1 %v1167_v13  ;;  %v1173_v17 = vld [vmem:[#allocation5 + $0x44] ss:$16 sps:$4 sm:$0xff]   ;;  %v1177_v18 = vld [vmem:[#allocation5 + $0x4c] ss:$16 sps:$4 sm:$0xff]  }
  0x5c   : > { %853 = vmatprep.subr.bf16.mxu0 %v1165_v11  ;;  %v1175_v19 = vld [vmem:[#allocation5 + $0x48] ss:$16 sps:$4 sm:$0xff]   ;;  %v1178_v20 = vld [vmem:[#allocation5 + $0x40] ss:$16 sps:$4 sm:$0xff]   ;;  %v1179_v21 = vld [vmem:[#allocation5 + $0x64] ss:$16 sps:$4 sm:$0xff]  }
  0x5d   : > { %v1183_v22 = vld [vmem:[#allocation5 + $0x6c] ss:$16 sps:$4 sm:$0xff]   ;;  %v1181_v23 = vld [vmem:[#allocation5 + $0x68] ss:$16 sps:$4 sm:$0xff]   ;;  %v1184_v24 = vld [vmem:[#allocation5 + $0x60] ss:$16 sps:$4 sm:$0xff]  }
  0x5e   : > { %1023 = vmatmul.mubr.msk.bf16.vlgmr.msra.gmra.mrb[0].mxu0 %vm357_vm0, %v320_v8  ;;  %815 = vmatpush1.bf16.msra.mxu1 %v1172_v16  ;;  %v1185_v25 = vld [vmem:[#allocation5 + $0x84] ss:$16 sps:$4 sm:$0xff]   ;;  %v1189_v26 = vld [vmem:[#allocation5 + $0x8c] ss:$16 sps:$4 sm:$0xff]   ;;  %v1187_v27 = vld [vmem:[#allocation5 + $0x88] ss:$16 sps:$4 sm:$0xff]  }
  0x5f   : > { %854 = vmatpush1.bf16.msra.mxu0 %v1163_v10  ;;  %816 = vmatprep.subr.bf16.mxu1 %v1173_v17  ;;  %v1190_v28 = vld [vmem:[#allocation5 + $0x80] ss:$16 sps:$4 sm:$0xff]   ;;  %v1191_v29 = vld [vmem:[#allocation5 + $0xa4] ss:$16 sps:$4 sm:$0xff]   ;;  %v1195_v30 = vld [vmem:[#allocation5 + $0xac] ss:$16 sps:$4 sm:$0xff]  }
  0x60   : > { %855 = vmatprep.subr.bf16.mxu0 %v1171_v14  ;;  %v1193_v31 = vld [vmem:[#allocation5 + $0xa8] ss:$16 sps:$4 sm:$0xff]   ;;  %v1196_v32 = vld [vmem:[#allocation5 + $0xa0] ss:$16 sps:$4 sm:$0xff]   ;;  %v1197_v33 = vld [vmem:[#allocation5 + $0xc4] ss:$16 sps:$4 sm:$0xff]  }
  0x61   : > { %v1201_v34 = vld [vmem:[#allocation5 + $0xcc] ss:$16 sps:$4 sm:$0xff]   ;;  %v1199_v35 = vld [vmem:[#allocation5 + $0xc8] ss:$16 sps:$4 sm:$0xff]   ;;  %v1202_v36 = vld [vmem:[#allocation5 + $0xc0] ss:$16 sps:$4 sm:$0xff]  }
  0x62   : > { %817 = vmatpush1.bf16.msra.mxu1 %v1178_v20  ;;  %v1203_v37 = vld [vmem:[#allocation5 + $0xe4] ss:$16 sps:$4 sm:$0xff]   ;;  %v1207_v38 = vld [vmem:[#allocation5 + $0xec] ss:$16 sps:$4 sm:$0xff]   ;;  %v1205_v39 = vld [vmem:[#allocation5 + $0xe8] ss:$16 sps:$4 sm:$0xff]  }
  0x63   : > { %856 = vmatpush1.bf16.msra.mxu0 %v1169_v15  ;;  %818 = vmatprep.subr.bf16.mxu1 %v1179_v21  ;;  %v1208_v40 = vld [vmem:[#allocation5 + $0xe0] ss:$16 sps:$4 sm:$0xff]   ;;  %v1209_v41 = vld [vmem:[#allocation5 + $0x104] ss:$16 sps:$4 sm:$0xff]   ;;  %v1213_v42 = vld [vmem:[#allocation5 + $0x10c] ss:$16 sps:$4 sm:$0xff]  }
  0x64   : > { %857 = vmatprep.subr.bf16.mxu0 %v1177_v18  ;;  %v1211_v43 = vld [vmem:[#allocation5 + $0x108] ss:$16 sps:$4 sm:$0xff]   ;;  %v1214_v44 = vld [vmem:[#allocation5 + $0x100] ss:$16 sps:$4 sm:$0xff]   ;;  %v1215_v45 = vld [vmem:[#allocation5 + $0x124] ss:$16 sps:$4 sm:$0xff]   ;;  %v327_v18 = vlaneseq }
  0x65   : > { %v1219_v46 = vld [vmem:[#allocation5 + $0x12c] ss:$16 sps:$4 sm:$0xff]   ;;  %v1217_v47 = vld [vmem:[#allocation5 + $0x128] ss:$16 sps:$4 sm:$0xff]   ;;  %v1220_v48 = vld [vmem:[#allocation5 + $0x120] ss:$16 sps:$4 sm:$0xff]  }
  0x66   : > { %819 = vmatpush1.bf16.msra.mxu1 %v1184_v24  ;;  %v1221_v49 = vld [vmem:[#allocation5 + $0x144] ss:$16 sps:$4 sm:$0xff]   ;;  %v1225_v50 = vld [vmem:[#allocation5 + $0x14c] ss:$16 sps:$4 sm:$0xff]   ;;  %v1223_v51 = vld [vmem:[#allocation5 + $0x148] ss:$16 sps:$4 sm:$0xff]  }
  0x67   : > { %858 = vmatpush1.bf16.msra.mxu0 %v1175_v19  ;;  %820 = vmatprep.subr.bf16.mxu1 %v1185_v25  ;;  %v1226_v52 = vld [vmem:[#allocation5 + $0x140] ss:$16 sps:$4 sm:$0xff]   ;;  %v1227_v53 = vld [vmem:[#allocation5 + $0x164] ss:$16 sps:$4 sm:$0xff]   ;;  %v1231_v54 = vld [vmem:[#allocation5 + $0x16c] ss:$16 sps:$4 sm:$0xff]  }
  0x68   : > { %859 = vmatprep.subr.bf16.mxu0 %v1183_v22  ;;  %v1229_v55 = vld [vmem:[#allocation5 + $0x168] ss:$16 sps:$4 sm:$0xff]   ;;  %v1232_v56 = vld [vmem:[#allocation5 + $0x160] ss:$16 sps:$4 sm:$0xff]   ;;  %v1233_v57 = vld [vmem:[#allocation5 + $0x184] ss:$16 sps:$4 sm:$0xff]  }
  0x69   : > { %v1237_v58 = vld [vmem:[#allocation5 + $0x18c] ss:$16 sps:$4 sm:$0xff]   ;;  %v1235_v59 = vld [vmem:[#allocation5 + $0x188] ss:$16 sps:$4 sm:$0xff]   ;;  %v1238_v60 = vld [vmem:[#allocation5 + $0x180] ss:$16 sps:$4 sm:$0xff]  }
  0x6a   : > { %821 = vmatpush1.bf16.msra.mxu1 %v1190_v28  ;;  %v1239_v61 = vld [vmem:[#allocation5 + $0x1a4] ss:$16 sps:$4 sm:$0xff]   ;;  %v1243_v62 = vld [vmem:[#allocation5 + $0x1ac] ss:$16 sps:$4 sm:$0xff]   ;;  %v1241_v63 = vld [vmem:[#allocation5 + $0x1a8] ss:$16 sps:$4 sm:$0xff]  }
  0x6b   : > { %860 = vmatpush1.bf16.msra.mxu0 %v1181_v23  ;;  %822 = vmatprep.subr.bf16.mxu1 %v1191_v29  ;;  %v1244_v0 = vld [vmem:[#allocation5 + $0x1a0] ss:$16 sps:$4 sm:$0xff]   ;;  %v1245_v1 = vld [vmem:[#allocation5 + $0x1c4] ss:$16 sps:$4 sm:$0xff]   ;;  %v1249_v4 = vld [vmem:[#allocation5 + $0x1cc] ss:$16 sps:$4 sm:$0xff]  }
  0x6c   : > { %861 = vmatprep.subr.bf16.mxu0 %v1189_v26  ;;  %v1247_v5 = vld [vmem:[#allocation5 + $0x1c8] ss:$16 sps:$4 sm:$0xff]   ;;  %v1250_v6 = vld [vmem:[#allocation5 + $0x1c0] ss:$16 sps:$4 sm:$0xff]   ;;  %v1251_v7 = vld [vmem:[#allocation5 + $0x1e4] ss:$16 sps:$4 sm:$0xff]  }
  0x6d   : > { %v1255_v8 = vld [vmem:[#allocation5 + $0x1ec] ss:$16 sps:$4 sm:$0xff]   ;;  %v1253_v9 = vld [vmem:[#allocation5 + $0x1e8] ss:$16 sps:$4 sm:$0xff]   ;;  %v1256_v10 = vld [vmem:[#allocation5 + $0x1e0] ss:$16 sps:$4 sm:$0xff]  }
  0x6e   : > { %823 = vmatpush1.bf16.msra.mxu1 %v1196_v32  ;;  %v328_v19 = vshrl.u32 %v327_v18, 7  ;;  %v325_v21 = vld [vmem:[%s1664_s3] sm:$0x3]  ;;  %s915_s8 = sshll.u32 %s295_s20, 4  ;;  %s901_s25 = scalar_lea.sflag [#allocation4], %s1566_s26  ;;  %s1619_s8 = int_to_ptr.vmem [resolvable:$true] %s915_s8 }
  0x6f   : > { %862 = vmatpush1.bf16.msra.mxu0 %v1187_v27  ;;  %824 = vmatprep.subr.bf16.mxu1 %v1197_v33  ;;  %s1317_s30 = scalar_lea.vmem %s1619_s8, 256  ;;  %s1394_s12 = smov [#allocation7]  }
  0x70   : > { %863 = vmatprep.subr.bf16.mxu0 %v1195_v30  ;;  %v329_v20 = vsub.s32 0, %v328_v19  ;;  %v333_v22 = vsub.s32 1, %v328_v19  ;;  %p1318_p6 = scmp.ne.s32.totalorder %s1619_s8, %s1317_s30  ;;  %s1321_s16 = sshll.u32 %s1394_s12, 4  ;;  %s1322_s16 = int_to_ptr.vmem [resolvable:$false] %s1321_s16 }
  0x71   : > { %s1323_s17 = scalar_lea.vmem %s1322_s16, 512  ;;  %p1324_p13 = scmp.lt.s32.totalorder %s1619_s8, %s1322_s16 }
  0x72   : > { %825 = vmatpush1.bf16.msra.mxu1 %v1202_v36  ;;  %v330_v23 = vrot.slane %v325_v21, %v329_v20  ;;  %v334_v24 = vrot.slane %v325_v21, %v333_v22  ;;  %v470_v36 = vld [vmem:[%s1666_s5] sm:$0xf]  ;;  %p1319_p8 = pnand %p1318_p6, %p1521_p12  ;;  %p1325_p3 = scmp.lt.s32.totalorder %s1323_s17, %s1317_s30 }
  0x73   : > { %864 = vmatpush1.bf16.msra.mxu0 %v1193_v31  ;;  %826 = vmatprep.subr.bf16.mxu1 %v1203_v37  ;;  %v482_v37 = vsub.s32 2, %v328_v19 }
  0x74   : > { %865 = vmatprep.subr.bf16.mxu0 %v1201_v34  ;;  %p1320_p10 = pneg %p1319_p8  ;;  %p1326_p7 = por %p1325_p3, %p1324_p13 }
  0x76   : > { %827 = vmatpush1.bf16.msra.mxu1 %v1208_v40  ;;  %p1327_p9 = pnand %p1326_p7, %p1320_p10 }
  0x77   : > { %866 = vmatpush1.bf16.msra.mxu0 %v1199_v35  ;;  %828 = vmatprep.subr.bf16.mxu1 %v1209_v41  ;;  %v479_v41 = vrot.slane %v470_v36, %v333_v22 }
  0x78   : > { %867 = vmatprep.subr.bf16.mxu0 %v1207_v38  ;;  %v486_v38 = vsub.s32 3, %v328_v19 }
  0x7a   : > { %829 = vmatpush1.bf16.msra.mxu1 %v1214_v44 }
  0x7b   : > { %868 = vmatpush1.bf16.msra.mxu0 %v1205_v39  ;;  %830 = vmatprep.subr.bf16.mxu1 %v1215_v45  ;;  %v475_v39 = vrot.slane %v470_v36, %v329_v20  ;;  %v487_v45 = vrot.slane %v470_v36, %v486_v38 }
  0x7c   : > { %869 = vmatprep.subr.bf16.mxu0 %v1213_v42  ;;  %v483_v42 = vrot.slane %v470_v36, %v482_v37 }
  0x7e   : > { %831 = vmatpush1.bf16.msra.mxu1 %v1220_v48 }
  0x7f   : > { %870 = vmatpush1.bf16.msra.mxu0 %v1211_v43  ;;  %832 = vmatprep.subr.bf16.mxu1 %v1221_v49 }
  0x80   : > { %871 = vmatprep.subr.bf16.mxu0 %v1219_v46 }
  0x82   : > { %833 = vmatpush1.bf16.msra.mxu1 %v1226_v52 }
  0x83   : > { %872 = vmatpush1.bf16.msra.mxu0 %v1217_v47  ;;  %834 = vmatprep.subr.bf16.mxu1 %v1227_v53 }
  0x84   : > { %873 = vmatprep.subr.bf16.mxu0 %v1225_v50 }
  0x86   : > { %835 = vmatpush1.bf16.msra.mxu1 %v1232_v56 }
  0x87   : > { %874 = vmatpush1.bf16.msra.mxu0 %v1223_v51  ;;  %836 = vmatprep.subr.bf16.mxu1 %v1233_v57 }
  0x88   : > { %875 = vmatprep.subr.bf16.mxu0 %v1231_v54 }
  0x8a   : > { %837 = vmatpush1.bf16.msra.mxu1 %v1238_v60 }
  0x8b   : > { %876 = vmatpush1.bf16.msra.mxu0 %v1229_v55  ;;  %838 = vmatprep.subr.bf16.mxu1 %v1239_v61 }
  0x8c   : > { %877 = vmatprep.subr.bf16.mxu0 %v1237_v58 }
  0x8e   : > { %839 = vmatpush1.bf16.msra.mxu1 %v1244_v0 }
  0x8f   : > { %878 = vmatpush1.bf16.msra.mxu0 %v1235_v59  ;;  %840 = vmatprep.subr.bf16.mxu1 %v1245_v1 }
  0x90   : > { %879 = vmatprep.subr.bf16.mxu0 %v1243_v62 }
  0x92   : > { %841 = vmatpush1.bf16.msra.mxu1 %v1250_v6 }
  0x93   : > { %880 = vmatpush1.bf16.msra.mxu0 %v1241_v63  ;;  %842 = vmatprep.subr.bf16.mxu1 %v1251_v7 }
  0x94   : > { %881 = vmatprep.subr.bf16.mxu0 %v1249_v4 }
  0x96   : > { %843 = vmatpush1.bf16.msra.mxu1 %v1256_v10 }
  0x97   : > { %882 = vmatpush1.bf16.msra.mxu0 %v1247_v5 }
  0x98   : > { %883 = vmatprep.subr.bf16.mxu0 %v1255_v8 }
  0x9b   : > { %884 = vmatpush1.bf16.msra.mxu0 %v1253_v9 }
  0xe6   : > { %v305_v11 = vpop.xlane.xlu0 %304 }
  0xe7   : > { %v307_v12 = vmul.f32 0.00390625, %v305_v11 }
  0xe9   : > { %v308_v13 = vsub.f32 %v1585_v2, %v307_v12  ;;  %v309_v14 = vsub.f32 %v1587_v3, %v307_v12 }
  0xeb   : > { %v310_v15 = vmul.f32 %v308_v13, %v308_v13  ;;  %v311_v16 = vmul.f32 %v309_v14, %v309_v14 }
  0xed   : > { %v312_v17 = vadd.f32 %v311_v16, %v310_v15 }
  0xef   : > { %313 = vadd.xlane.f32.xlu0 %v312_v17 }
 0x131   : > { %v395_v25 = vpop.f32.mrb[0].mxu0 }
 0x132   : > { %v396_v26 = vadd.f32 %v395_v25, %v330_v23  ;;  %v397_v27 = vpop.f32.mrb[1].mxu0 }
 0x133   : > { %v398_v2 = vadd.f32 %v397_v27, %v334_v24  ;;  %v399_v28 = vpop.f32.mrb[2].mxu0 }
 0x134   : > { %v402_v3 = vmax.f32 %v396_v26, 0.0  ;;  %v400_v29 = vpop.f32.mrb[3].mxu0 }
 0x135   : > { %v403_v30 = vmax.f32 %v398_v2, 0.0 }
 0x136   : > { %v404_v32 = vpack.c.bf16 %v402_v3, %v402_v3 }
 0x137   : > { %v405_v31 = vpack.c.bf16 %v403_v30, %v403_v30 }
 0x139   : > { %844 = vmatprep.mubr.bf16.mxu1 %v405_v31  ;;  %885 = vmatprep.mubr.bf16.mxu0 %v405_v31 }
 0x13a   : > { %845 = vmatmul.mubr.bf16.vlgmr.msra.gmra.mrb[0].mxu1 %v404_v32  ;;  %886 = vmatmul.mubr.bf16.vlgmr.msra.gmra.mrb[4].mxu0 %v404_v32 }
 0x17c   : > { %v314_v33 = vpop.xlane.xlu0 %313 }
 0x17d   : > { %v315_v34 = vmul.f32 0.00390625, %v314_v33 }
 0x17f   : > { %v316_v35 = vadd.f32 1e-05, %v315_v34 }
 0x181   : > { %1257 = vrsqrt.f32 %v316_v35 }
 0x18b   : > { %v1258_v40 = vpop.eup %1257 }
 0x18c   : > { %v318_v46 = vmul.f32 %v1258_v40, %v308_v13  ;;  %v319_v50 = vmul.f32 %v1258_v40, %v309_v14 }
 0x20d   : > { %v846_v43 = vpop.f32.mrb[0].mxu1  ;;  %v887_v44 = vpop.f32.mrb[4].mxu0 }
 0x20e   : > { %v847_v47 = vadd.f32 %v846_v43, %v475_v39  ;;  %v848_v48 = vpop.f32.mrb[1].mxu1  ;;  %v889_v49 = vpop.f32.mrb[5].mxu0  ;;  %v888_v55 = vadd.f32 %v887_v44, %v483_v42 }
 0x20f   : > { %v849_v51 = vadd.f32 %v848_v48, %v479_v41  ;;  %v850_v52 = vpop.f32.mrb[2].mxu1  ;;  %v891_v53 = vpop.f32.mrb[6].mxu0  ;;  %v890_v59 = vadd.f32 %v889_v49, %v487_v45 }
 0x210   : > { %v894_v54 = vmul.f32 %v847_v47, %v318_v46  ;;  %v851_v56 = vpop.f32.mrb[3].mxu1  ;;  %v892_v57 = vpop.f32.mrb[7].mxu0 }
 0x211   : > { %v895_v58 = vmul.f32 %v849_v51, %v319_v50 }
 0x212   : > { %v896_v60 = vadd.f32 %v894_v54, %v888_v55 }
 0x213   : > { %v897_v61 = vadd.f32 %v895_v58, %v890_v59 }
 0x214   : > { %898 = vst [vmem:[%s295_s20] sm:$0xff] %v896_v60 }
 0x215   : > { %899 = vst [vmem:[%s295_s20 + $0x8] sm:$0xff] %v897_v61 }
 0x216   : > { %1330 = shalt.err (!%p1327_p9)
}
 0x217   : > { %s1331_s26 = scalar_lea.hbm %s1617_s7, 256  ;;  %s1335_s10 = scalar_lea.hbm %s1667_s6, 512 }
 0x218   : > { %p1332_p2 = scmp.ne.s32.totalorder %s1617_s7, %s1331_s26  ;;  %p1336_p11 = scmp.lt.u32.totalorder %s1617_s7, %s1667_s6 }
 0x219   : > { %p1337_p1 = scmp.lt.u32.totalorder %s1335_s10, %s1331_s26  ;;  %p1339_p6 = scmp.lt.u32.totalorder %s1331_s26, %s1617_s7 }
 0x21a   : > { %p1333_p5 = pnand %p1332_p2, %p1521_p12 }
 0x21b   : > { %p1338_p4 = por %p1337_p1, %p1336_p11 }
 0x21c   : > { %p1334_p0 = pneg %p1333_p5 }
 0x21d   : > { %p1340_p8 = por %p1339_p6, %p1338_p4 }
 0x21f   : > { %p1341_p10 = pnand %p1340_p8, %p1334_p0 }
 0x221   : > { %1344 = shalt.err (!%p1341_p10)
}
 0x222   : > { %1101 = dma.vmem_to_hbm [thread:$0]  (%p1521_p12), %s1619_s8, 256, %s1617_s7, %s901_s25  }
 0x223 PF: > { %s927_s20 = sand.u32 1, %s1375_s21   ;;  %p1682_p13 = scmp.ne.s32.totalorder %s1672_s28, 0 }
 0x224   : > { %p1683_p3 = scmp.ge.s32.totalorder %s1387_s24, 2  ;;  %s928_s15 = scalar_lea.sflag [#allocation4], %s927_s20 }
 0x226   : > { %p1112_p7 = pnand %p1683_p3, %p1682_p13 }
 0x228   : > { %1370 = dma.done.wait (!%p1112_p7), %s928_s15, 256  }
 0x229   : > { %1372 = vsyncadd (!%p1112_p7), %s928_s15, 4294967040  ;;  %p20_p9 = scmp.ge.s32.totalorder %s1486_s9, 4   ;;  %s1684_s21 = smov %s1379_s22 }
 0x22a   : > { %s1685_s22 = smov %s1383_s23  ;;  %s1686_s23 = smov %s1517_s13 }
 0x22b   : > { %s1687_s24 = smov %s1486_s9  ;;  %22 = sbr.rel (!%p20_p9) target bundleno = 6 (0x6), region = 96 }
 0x232   :  { %933 = vsyncpa [#allocation3], 1 }
 0x233   :  { %935 = vsyncpa [#allocation3 + $0x1], 1 }
 0x234   :  { %936 = vsyncpa [#allocation6], 1 }
 0x235   :  { %937 = vsyncpa [#allocation4], 1 }
 0x236   :  { %939 = vsyncpa [#allocation4 + $0x1], 1 }

</bundles_post_ra>
